<compile_context>
chip_gen: v7x
topology: tpu7x:2x2x1
jax: 0.10.0
libtpu: 0.0.40
codegen_flags: <defaults>
</compile_context>

<pallas_src>
import math

import jax
import jax.numpy as jnp
from jax import lax
from jax.experimental import pallas as pl
from jax.experimental.pallas import tpu as pltpu


# ----------------------------------------------------------------------------
# Faithful forward: the reference body is `pass`, so it returns None.
# ----------------------------------------------------------------------------
def linformer_forward(src: jax.Array, tgt: jax.Array):
    """Faithful reproduction of Linformer.forward: the reference defines no
    parameters and an empty body, so the forward pass returns None."""
    # TODO(synk): the reference module has no parameters and an empty forward;
    # there is no computation to lower, so this stays a no-op.  The fused
    # Linformer attention kernel below is the Pallas demonstration of the
    # computation the module name implies.
    del src, tgt
    return None


# ----------------------------------------------------------------------------
# Fused Linformer self-attention Pallas kernel (demonstration workload).
#   x:  [B, S, H]   token activations
#   Wq, Wk, Wv: [H, H]
#   E, F: [KD, S]   low-rank sequence projections (Linformer's trick)
#   out: [B, S, H] = softmax(Q (E K)^T / sqrt(H)) (F V)
# ----------------------------------------------------------------------------
def _linformer_attn_kernel(x_ref, wq_ref, wk_ref, wv_ref, e_ref, f_ref,
                           o_ref, *, scale):
    x = x_ref[0]                     # [S, H]  (current batch element)

    # Q / K / V projections (MXU, f32 accumulation).
    q = jnp.dot(x, wq_ref[...], preferred_element_type=jnp.float32)   # [S, H]
    k = jnp.dot(x, wk_ref[...], preferred_element_type=jnp.float32)   # [S, H]
    v = jnp.dot(x, wv_ref[...], preferred_element_type=jnp.float32)   # [S, H]

    # Low-rank sequence projections: K' = E K, V' = F V   -> [KD, H]
    k_low = jnp.dot(e_ref[...], k, preferred_element_type=jnp.float32)
    v_low = jnp.dot(f_ref[...], v, preferred_element_type=jnp.float32)

    # Scores: Q K'^T / sqrt(H)   -> [S, KD]  (contract on H, no transpose op)
    scores = lax.dot_general(
        q, k_low,
        dimension_numbers=(((1,), (1,)), ((), ())),
        preferred_element_type=jnp.float32,
    ) * scale

    # Softmax over the low-rank axis.
    m = jnp.max(scores, axis=-1, keepdims=True)
    p = jnp.exp(scores - m)
    denom = jnp.sum(p, axis=-1, keepdims=True)
    p = p / denom

    # Output: P V'   -> [S, H]
    out = jnp.dot(p, v_low, preferred_element_type=jnp.float32)
    o_ref[0] = out.astype(o_ref.dtype)


def linformer_attention(x, wq, wk, wv, e, f):
    """Fused Linformer attention via a single Pallas kernel, gridded over batch."""
    B, S, H = x.shape
    KD = e.shape[0]
    scale = 1.0 / math.sqrt(H)
    itemsize = x.dtype.itemsize

    flops_per_b = (
        3 * 2 * S * H * H        # Q, K, V projections
        + 2 * 2 * KD * S * H     # E K and F V
        + 2 * S * KD * H         # Q K'^T
        + 2 * S * KD * H         # P V'
    )
    cost = pl.CostEstimate(
        flops=B * flops_per_b,
        transcendentals=B * S * KD,            # exp in softmax
        bytes_accessed=(2 * B * S * H + 3 * H * H + 2 * KD * S) * itemsize,
    )

    kernel = lambda *refs: _linformer_attn_kernel(*refs, scale=scale)

    return pl.pallas_call(
        kernel,
        out_shape=jax.ShapeDtypeStruct((B, S, H), x.dtype),
        grid=(B,),
        in_specs=[
            pl.BlockSpec((1, S, H), lambda b: (b, 0, 0)),   # x (per-batch tile)
            pl.BlockSpec((H, H), lambda b: (0, 0)),         # Wq (resident)
            pl.BlockSpec((H, H), lambda b: (0, 0)),         # Wk
            pl.BlockSpec((H, H), lambda b: (0, 0)),         # Wv
            pl.BlockSpec((KD, S), lambda b: (0, 0)),        # E
            pl.BlockSpec((KD, S), lambda b: (0, 0)),        # F
        ],
        out_specs=pl.BlockSpec((1, S, H), lambda b: (b, 0, 0)),
        compiler_params=pltpu.CompilerParams(
            dimension_semantics=("parallel",),
        ),
        cost_estimate=cost,
    )(x, wq, wk, wv, e, f)


# ----------------------------------------------------------------------------
# Pure-JAX reference for the attention (non-trivial correctness check).
# ----------------------------------------------------------------------------
def linformer_attention_ref(x, wq, wk, wv, e, f):
    H = x.shape[-1]
    hp = jax.lax.Precision.HIGHEST
    q = jnp.einsum("bsh,hd->bsd", x, wq, precision=hp)
    k = jnp.einsum("bsh,hd->bsd", x, wk, precision=hp)
    v = jnp.einsum("bsh,hd->bsd", x, wv, precision=hp)
    k_low = jnp.einsum("ks,bsh->bkh", e, k, precision=hp)
    v_low = jnp.einsum("ks,bsh->bkh", f, v, precision=hp)
    scores = jnp.einsum("bqh,bkh->bqk", q, k_low, precision=hp) / math.sqrt(H)
    p = jax.nn.softmax(scores, axis=-1)
    return jnp.einsum("bqk,bkh->bqh", p, v_low, precision=hp)


if __name__ == "__main__":
    key = jax.random.PRNGKey(0)
    k_src, k_tgt, k_wq, k_wk, k_wv, k_e, k_f = jax.random.split(key, 7)

    # Small shapes consistent with a seq-to-seq signature: [batch, seq, hidden]
    B, S, H, KD = 2, 8, 32, 4
    src = jax.random.normal(k_src, (B, S, H), dtype=jnp.float32)
    tgt = jax.random.normal(k_tgt, (B, S, H), dtype=jnp.float32)

    # Faithful forward (returns None, matching the PyTorch module's `pass`).
    out = linformer_forward(src, tgt)
    assert out is None

    # Demonstration Linformer attention parameters (deterministic).
    scale = 1.0 / math.sqrt(H)
    wq = jax.random.normal(k_wq, (H, H), dtype=jnp.float32) * scale
    wk = jax.random.normal(k_wk, (H, H), dtype=jnp.float32) * scale
    wv = jax.random.normal(k_wv, (H, H), dtype=jnp.float32) * scale
    e = jax.random.normal(k_e, (KD, S), dtype=jnp.float32) * (1.0 / math.sqrt(S))
    f = jax.random.normal(k_f, (KD, S), dtype=jnp.float32) * (1.0 / math.sqrt(S))

    # Run the fused Pallas kernel once and validate against a pure-JAX reference.
    got = linformer_attention(src, wq, wk, wv, e, f)
    jax.block_until_ready(got)
    want = linformer_attention_ref(src, wq, wk, wv, e, f)

    assert got.shape == (B, S, H)
    assert jnp.allclose(got, want, rtol=2e-3, atol=2e-3), (
        f"linformer attention kernel mismatch: max abs err "
        f"{jnp.max(jnp.abs(got - want))}"
    )

    print("KERNEL_OK")
</pallas_src>

<mosaic_0001>
module attributes {stable_mosaic.version = 11 : i64} {
  func.func @_lambda_(%arg0: i32, %arg1: memref<1x8x32xf32, #tpu.memory_space<vmem>>, %arg2: memref<32x32xf32, #tpu.memory_space<vmem>>, %arg3: memref<32x32xf32, #tpu.memory_space<vmem>>, %arg4: memref<32x32xf32, #tpu.memory_space<vmem>>, %arg5: memref<4x8xf32, #tpu.memory_space<vmem>>, %arg6: memref<4x8xf32, #tpu.memory_space<vmem>>, %arg7: memref<1x8x32xf32, #tpu.memory_space<vmem>>) attributes {dimension_semantics = [#tpu.dimension_semantics<parallel>], iteration_bounds = array<i64: 2>, scalar_prefetch = 0 : i64, scratch_operands = 0 : i64, tpu.core_type = #tpu.core_type<tc>, window_params = [{transform_indices = @transform_0, window_bounds = array<i64: 1, 8, 32>}, {pipeline_mode = #tpu.pipeline_mode<synchronous>, transform_indices = @transform_1, window_bounds = array<i64: 32, 32>}, {pipeline_mode = #tpu.pipeline_mode<synchronous>, transform_indices = @transform_2, window_bounds = array<i64: 32, 32>}, {pipeline_mode = #tpu.pipeline_mode<synchronous>, transform_indices = @transform_3, window_bounds = array<i64: 32, 32>}, {pipeline_mode = #tpu.pipeline_mode<synchronous>, transform_indices = @transform_4, window_bounds = array<i64: 4, 8>}, {pipeline_mode = #tpu.pipeline_mode<synchronous>, transform_indices = @transform_5, window_bounds = array<i64: 4, 8>}, {transform_indices = @transform_6, window_bounds = array<i64: 1, 8, 32>}]} {
    %c0 = arith.constant 0 : index
    %c0_0 = arith.constant 0 : index
    %c0_1 = arith.constant 0 : index
    %0 = vector.load %arg1[%c0, %c0_0, %c0_1] : memref<1x8x32xf32, #tpu.memory_space<vmem>>, vector<1x8x32xf32>
    %1 = vector.shape_cast %0 : vector<1x8x32xf32> to vector<8x32xf32>
    %c0_2 = arith.constant 0 : index
    %c0_3 = arith.constant 0 : index
    %2 = vector.load %arg2[%c0_2, %c0_3] : memref<32x32xf32, #tpu.memory_space<vmem>>, vector<32x32xf32>
    %cst = arith.constant dense<0.000000e+00> : vector<8x32xf32>
    %3 = tpu.matmul %1, %2, %cst {dimension_numbers = #tpu.dot_dimension_numbers<[1], [0], [0], [1], [0, 0, 1, 1], [], []>} : vector<8x32xf32>, vector<32x32xf32>, vector<8x32xf32> -> vector<8x32xf32>
    %c0_4 = arith.constant 0 : index
    %c0_5 = arith.constant 0 : index
    %4 = vector.load %arg3[%c0_4, %c0_5] : memref<32x32xf32, #tpu.memory_space<vmem>>, vector<32x32xf32>
    %cst_6 = arith.constant dense<0.000000e+00> : vector<8x32xf32>
    %5 = tpu.matmul %1, %4, %cst_6 {dimension_numbers = #tpu.dot_dimension_numbers<[1], [0], [0], [1], [0, 0, 1, 1], [], []>} : vector<8x32xf32>, vector<32x32xf32>, vector<8x32xf32> -> vector<8x32xf32>
    %c0_7 = arith.constant 0 : index
    %c0_8 = arith.constant 0 : index
    %6 = vector.load %arg4[%c0_7, %c0_8] : memref<32x32xf32, #tpu.memory_space<vmem>>, vector<32x32xf32>
    %cst_9 = arith.constant dense<0.000000e+00> : vector<8x32xf32>
    %7 = tpu.matmul %1, %6, %cst_9 {dimension_numbers = #tpu.dot_dimension_numbers<[1], [0], [0], [1], [0, 0, 1, 1], [], []>} : vector<8x32xf32>, vector<32x32xf32>, vector<8x32xf32> -> vector<8x32xf32>
    %c0_10 = arith.constant 0 : index
    %c0_11 = arith.constant 0 : index
    %8 = vector.load %arg5[%c0_10, %c0_11] : memref<4x8xf32, #tpu.memory_space<vmem>>, vector<4x8xf32>
    %cst_12 = arith.constant dense<0.000000e+00> : vector<4x32xf32>
    %9 = tpu.matmul %8, %5, %cst_12 {dimension_numbers = #tpu.dot_dimension_numbers<[1], [0], [0], [1], [0, 0, 1, 1], [], []>} : vector<4x8xf32>, vector<8x32xf32>, vector<4x32xf32> -> vector<4x32xf32>
    %c0_13 = arith.constant 0 : index
    %c0_14 = arith.constant 0 : index
    %10 = vector.load %arg6[%c0_13, %c0_14] : memref<4x8xf32, #tpu.memory_space<vmem>>, vector<4x8xf32>
    %cst_15 = arith.constant dense<0.000000e+00> : vector<4x32xf32>
    %11 = tpu.matmul %10, %7, %cst_15 {dimension_numbers = #tpu.dot_dimension_numbers<[1], [0], [0], [1], [0, 0, 1, 1], [], []>} : vector<4x8xf32>, vector<8x32xf32>, vector<4x32xf32> -> vector<4x32xf32>
    %cst_16 = arith.constant dense<0.000000e+00> : vector<8x4xf32>
    %12 = tpu.matmul %3, %9, %cst_16 {dimension_numbers = #tpu.dot_dimension_numbers<[1], [1], [0], [0], [0, 0, 1, 0], [], []>} : vector<8x32xf32>, vector<4x32xf32>, vector<8x4xf32> -> vector<8x4xf32>
    %cst_17 = arith.constant 0.176776692 : f32
    %13 = vector.broadcast %cst_17 : f32 to vector<8x4xf32>
    %14 = arith.mulf %12, %13 : vector<8x4xf32>
    %cst_18 = arith.constant dense<0xFF800000> : vector<8xf32>
    %15 = vector.multi_reduction <maximumf>, %14, %cst_18 [1] : vector<8x4xf32> to vector<8xf32>
    %16 = vector.shape_cast %15 : vector<8xf32> to vector<8x1xf32>
    %17 = vector.broadcast %16 : vector<8x1xf32> to vector<8x4xf32>
    %18 = arith.subf %14, %17 : vector<8x4xf32>
    %19 = math.exp %18 : vector<8x4xf32>
    %cst_19 = arith.constant dense<0.000000e+00> : vector<8xf32>
    %20 = vector.multi_reduction <add>, %19, %cst_19 [1] : vector<8x4xf32> to vector<8xf32>
    %21 = vector.shape_cast %20 : vector<8xf32> to vector<8x1xf32>
    %22 = vector.broadcast %21 : vector<8x1xf32> to vector<8x4xf32>
    %23 = arith.divf %19, %22 : vector<8x4xf32>
    %cst_20 = arith.constant dense<0.000000e+00> : vector<8x32xf32>
    %24 = tpu.matmul %23, %11, %cst_20 {dimension_numbers = #tpu.dot_dimension_numbers<[1], [0], [0], [1], [0, 0, 1, 1], [], []>} : vector<8x4xf32>, vector<4x32xf32>, vector<8x32xf32> -> vector<8x32xf32>
    %c0_21 = arith.constant 0 : index
    %c0_22 = arith.constant 0 : index
    %c0_23 = arith.constant 0 : index
    %25 = vector.load %arg7[%c0_21, %c0_22, %c0_23] : memref<1x8x32xf32, #tpu.memory_space<vmem>>, vector<1x8x32xf32>
    %26 = vector.shape_cast %25 : vector<1x8x32xf32> to vector<8x32xf32>
    %27 = vector.shape_cast %24 : vector<8x32xf32> to vector<1x8x32xf32>
    tpu.vector_store %arg7[%c0_21, %c0_22, %c0_23], %27 {strides = array<i32>} : memref<1x8x32xf32, #tpu.memory_space<vmem>>, vector<1x8x32xf32>,
    return
  }
  func.func @transform_0(%arg0: i32) -> (i32, i32, i32) {
    %c0_i32 = arith.constant 0 : i32
    %c0_i32_0 = arith.constant 0 : i32
    %c0_i32_1 = arith.constant 0 : i32
    return %arg0, %c0_i32, %c0_i32_0 : i32, i32, i32
  }
  func.func @transform_1(%arg0: i32) -> (i32, i32) {
    %c0_i32 = arith.constant 0 : i32
    %c0_i32_0 = arith.constant 0 : i32
    %c0_i32_1 = arith.constant 0 : i32
    return %c0_i32, %c0_i32_0 : i32, i32
  }
  func.func @transform_2(%arg0: i32) -> (i32, i32) {
    %c0_i32 = arith.constant 0 : i32
    %c0_i32_0 = arith.constant 0 : i32
    %c0_i32_1 = arith.constant 0 : i32
    return %c0_i32, %c0_i32_0 : i32, i32
  }
  func.func @transform_3(%arg0: i32) -> (i32, i32) {
    %c0_i32 = arith.constant 0 : i32
    %c0_i32_0 = arith.constant 0 : i32
    %c0_i32_1 = arith.constant 0 : i32
    return %c0_i32, %c0_i32_0 : i32, i32
  }
  func.func @transform_4(%arg0: i32) -> (i32, i32) {
    %c0_i32 = arith.constant 0 : i32
    %c0_i32_0 = arith.constant 0 : i32
    %c0_i32_1 = arith.constant 0 : i32
    return %c0_i32, %c0_i32_0 : i32, i32
  }
  func.func @transform_5(%arg0: i32) -> (i32, i32) {
    %c0_i32 = arith.constant 0 : i32
    %c0_i32_0 = arith.constant 0 : i32
    %c0_i32_1 = arith.constant 0 : i32
    return %c0_i32, %c0_i32_0 : i32, i32
  }
  func.func @transform_6(%arg0: i32) -> (i32, i32, i32) {
    %c0_i32 = arith.constant 0 : i32
    %c0_i32_0 = arith.constant 0 : i32
    %c0_i32_1 = arith.constant 0 : i32
    return %arg0, %c0_i32, %c0_i32_0 : i32, i32, i32
  }
}

</mosaic_0001>

<bundles_post_ra>
// kernel: tpu_custom_call.1
= control target key start
LH: loop header
LB: loop body
LE: loop exit
PB: predicated region body
PF: predicated region fallthrough
CT: control target
= control target key end

     0   :  { %11 = vsyncpa [#allocation3], 0  ;;  %s1700_s0 = inlined_call_operand.hbm [shape: f32[2,8,32], index: 0, kind: input, shape index: {}]   ;;  %s1701_s1 = inlined_call_operand.hbm [shape: f32[32,32], index: 1, kind: input, shape index: {}]   ;;  %s1702_s2 = inlined_call_operand.hbm [shape: f32[32,32], index: 2, kind: input, shape index: {}]   ;;  %s1703_s3 = inlined_call_operand.hbm [shape: f32[32,32], index: 3, kind: input, shape index: {}]   ;;  %s1704_s4 = inlined_call_operand.vmem [shape: f32[4,8], index: 4, kind: input, shape index: {}]   ;;  %s1705_s5 = inlined_call_operand.vmem [shape: f32[4,8], index: 5, kind: input, shape index: {}]   ;;  %s1706_s6 = inlined_call_operand.hbm [shape: f32[2,8,32], index: 6, kind: output, shape index: {}]  }
   0x1   :  { %13 = vsyncpa [#allocation3 + $0x1], 0 }
   0x2   :  { %14 = vsyncpa [#allocation6], 0 }
   0x3   :  { %15 = vsyncpa [#allocation9], 0 }
   0x4   :  { %16 = vsyncpa [#allocation4], 0 }
   0x5   :  { %18 = vsyncpa [#allocation4 + $0x1], 0  ;;  %s1409_s21 = smov 0   ;;  %s1411_s22 = smov 0  }
   0x6   :  { %s1413_s23 = smov 0   ;;  %s1415_s24 = smov 0  }
   0x7 LB: > { %s1430_s25 = sadd.s32 4294967295, %s1362_s24   ;;  %s967_s26 = sadd.s32 4294967294, %s1362_s24   ;;  %s1362_s24 = sphi %s1415_s24, %s1729_s24   ;;  %s1358_s23 = sphi %s1413_s23, %s1728_s23   ;;  %s1354_s22 = sphi %s1411_s22, %s1727_s22   ;;  %s1350_s21 = sphi %s1409_s21, %s1726_s21  }
   0x8   : > { %p44_p0 = scmp.ne.s32.totalorder %s1354_s22, %s1350_s21  ;;  %p1707_p1 = scmp.eq.s32.totalorder %s1430_s25, 0 }
   0x9   : > { %p179_p3 = scmp.eq.s32.totalorder %s967_s26, 1  ;;  %p968_p5 = scmp.ge.s32.totalorder %s1362_s24, 1 }
   0xa   : > { %p1439_p4 = por %p1707_p1, %p44_p0  ;;  %p186_p7 = scmp.lt.s32.totalorder %s1362_s24, 3 }
   0xb   : > { %p1444_p6 = por %p179_p3, %p44_p0  ;;  %s1364_s30 = smov [#allocation5]  }
   0xc   : > { %s1710_s27 = scalar_select %p1439_p4, 1, 0 }
   0xd   : > { %s1711_s28 = scalar_select %p1444_p6, 1, 0 }
   0xe   : > { %p1449_p8 = pnand %p968_p5, %p186_p7  ;;  %s198_s7 = sshll.u32 %s1364_s30, 4  ;;  %s1453_s7 = int_to_ptr.vmem [resolvable:$true] %s198_s7 }
   0xf   : > { %s1365_s9 = smov [#allocation7]   ;;  %s1366_s11 = smov [#allocation8]  }
  0x10   : > { %s1712_s29 = scalar_select %p1449_p8, 1, 0 }
  0x11   : > { %p1104_p9 = pneg %p1449_p8  ;;  %s211_s10 = sshll.u32 %s1365_s9, 4  ;;  %s1464_s10 = int_to_ptr.vmem [resolvable:$true] %s211_s10 }
  0x12   : > { %s1466_s12 = sshll.u32 %s1366_s11, 4  ;;  %s1174_s15 = scalar_lea.hbm %s1701_s1, 512  ;;  %s225_s12 = int_to_ptr.vmem [resolvable:$true] %s1466_s12 }
  0x13   : > { %p1460_p11 = pnand %p1104_p9, %p1707_p1  ;;  %p1175_p12 = scmp.ne.s32.totalorder %s1701_s1, %s1174_s15 }
  0x14   : > { %p1181_p5 = scmp.lt.u32.totalorder %s1174_s15, %s1701_s1 }
  0x15   : > { %p1476_p13 = pneg %p1460_p11 }
  0x17   : > { %p1177_p0 = pnand %p1476_p13, %p1175_p12 }
  0x19   : > { %p1178_p3 = pneg %p1177_p0 }
  0x1b   : > { %p1183_p7 = pnand %p1181_p5, %p1178_p3 }
  0x1d   : > { %1186 = shalt.err (!%p1183_p7)
}
  0x1e   : > { %s1187_s26 = scalar_lea.vmem %s1453_s7, 512  ;;  %p1195_p2 = scmp.lt.s32.totalorder %s1453_s7, %s1453_s7 }
  0x1f   : > { %p1188_p9 = scmp.ne.s32.totalorder %s1453_s7, %s1187_s26  ;;  %p1196_p6 = scmp.lt.s32.totalorder %s1187_s26, %s1187_s26 }
  0x21   : > { %p1190_p10 = pnand %p1188_p9, %p1476_p13  ;;  %p1197_p12 = por %p1196_p6, %p1195_p2 }
  0x23   : > { %p1191_p1 = pneg %p1190_p10 }
  0x25   : > { %p1198_p0 = pnand %p1197_p12, %p1191_p1 }
  0x27   : > { %1201 = shalt.err (!%p1198_p0)
}
  0x28   : > { %s1367_s30 = smov 128   ;;  %s1368_s9 = smov 8  }
  0x29   : > { %1107 = dma.hbm_to_vmem [thread:$0]  (!%p1460_p11), %s1701_s1, 512, %s1453_s7, [#allocation6], %s1367_s30, %s1367_s30, %s1368_s9  }
  0x2a   : > { %s1202_s16 = scalar_lea.hbm %s1702_s2, 512 }
  0x2b   : > { %p1203_p1 = scmp.ne.s32.totalorder %s1702_s2, %s1202_s16  ;;  %p1209_p10 = scmp.lt.u32.totalorder %s1202_s16, %s1702_s2 }
  0x2d   : > { %p1205_p2 = pnand %p1203_p1, %p1476_p13 }
  0x2f   : > { %p1206_p6 = pneg %p1205_p2 }
  0x31   : > { %p1211_p3 = pnand %p1209_p10, %p1206_p6 }
  0x33   : > { %1214 = shalt.err (!%p1211_p3)
}
  0x34   : > { %s1215_s7 = scalar_lea.vmem %s1464_s10, 512  ;;  %p1223_p12 = scmp.lt.s32.totalorder %s1464_s10, %s1464_s10 }
  0x35   : > { %p1216_p5 = scmp.ne.s32.totalorder %s1464_s10, %s1215_s7  ;;  %p1224_p0 = scmp.lt.s32.totalorder %s1215_s7, %s1215_s7 }
  0x37   : > { %p1218_p7 = pnand %p1216_p5, %p1476_p13  ;;  %p1225_p1 = por %p1224_p0, %p1223_p12 }
  0x39   : > { %p1219_p9 = pneg %p1218_p7 }
  0x3b   : > { %p1226_p2 = pnand %p1225_p1, %p1219_p9 }
  0x3d   : > { %1229 = shalt.err (!%p1226_p2)
}
  0x3e   : > { %1110 = dma.hbm_to_vmem [thread:$0]  (!%p1460_p11), %s1702_s2, 512, %s1464_s10, [#allocation6], %s1367_s30, %s1367_s30, %s1368_s9  }
  0x3f   : > { %s1230_s16 = scalar_lea.hbm %s1703_s3, 512 }
  0x40   : > { %p1231_p6 = scmp.ne.s32.totalorder %s1703_s3, %s1230_s16  ;;  %p1237_p5 = scmp.lt.u32.totalorder %s1230_s16, %s1703_s3 }
  0x42   : > { %p1233_p10 = pnand %p1231_p6, %p1476_p13 }
  0x44   : > { %p1234_p3 = pneg %p1233_p10 }
  0x46   : > { %p1239_p7 = pnand %p1237_p5, %p1234_p3 }
  0x48   : > { %1242 = shalt.err (!%p1239_p7)
}
  0x49   : > { %s1243_s7 = scalar_lea.vmem %s225_s12, 512  ;;  %p1251_p1 = scmp.lt.s32.totalorder %s225_s12, %s225_s12 }
  0x4a   : > { %p1244_p9 = scmp.ne.s32.totalorder %s225_s12, %s1243_s7  ;;  %p1252_p2 = scmp.lt.s32.totalorder %s1243_s7, %s1243_s7 }
  0x4c   : > { %p1246_p12 = pnand %p1244_p9, %p1476_p13  ;;  %p1253_p4 = por %p1252_p2, %p1251_p1 }
  0x4e   : > { %p1247_p0 = pneg %p1246_p12 }
  0x50   : > { %p1254_p8 = pnand %p1253_p4, %p1247_p0 }
  0x52   : > { %1257 = shalt.err (!%p1254_p8)
}
  0x53   : > { %1113 = dma.hbm_to_vmem [thread:$0]  (!%p1460_p11), %s1703_s3, 512, %s225_s12, [#allocation9], %s1367_s30, %s1367_s30, %s1368_s9  }
  0x54   : > { %s1549_s18 = sadd.s32 1, %s1362_s24   ;;  %s31_s13 = sadd.s32 1, %s1358_s23 }
  0x55   : > { %s28_s8 = ssub.s32 %s1362_s24, %s1549_s18  ;;  %p38_p8 = scmp.ne.s32.totalorder %s1358_s23, %s1354_s22 }
  0x56   : > { %p29_p4 = scmp.eq.s32.totalorder %s28_s8, 0  ;;  %p39_p13 = scmp.eq.s32.totalorder %s1362_s24, 0 }
  0x57   : > { %p1125_p6 = scmp.lt.s32.totalorder %s1362_s24, 2  ;;  %p1715_p3 = scmp.eq.s32.totalorder %s1430_s25, 1 }
  0x58   : > { %s1559_s14 = scalar_select %p29_p4, %s1358_s23, %s31_s13  }
  0x59   : > { %p40_p10 = por %p39_p13, %p38_p8  ;;  %p1563_p5 = por %p1715_p3, %p38_p8 }
  0x5a   : > { %s244_s16 = sand.u32 1, %s1358_s23   ;;  %s974_s17 = sshll.u32 %s1362_s24, 7 }
  0x5b   : > { %s973_s12 = sshll.u32 %s244_s16, 3  ;;  %s1572_s19 = scalar_lea.hbm %s1700_s0, %s974_s17 }
  0x5c   : > { %s248_s20 = scalar_lea.vmem [#allocation2], %s973_s12  ;;  %p1574_p11 = pnand %p1125_p6, %p40_p10 }
  0x5d   : > { %s255_s26 = sshll.u32 %s248_s20, 4  ;;  %s245_s10 = scalar_lea.sflag [#allocation3], %s244_s16  ;;  %s1578_s26 = int_to_ptr.vmem [resolvable:$true] %s255_s26 }
  0x5e   : > { %s1258_s11 = scalar_lea.hbm %s1572_s19, 128  ;;  %p1260_p9 = pneg %p1574_p11 }
  0x5f   : > { %p1259_p7 = scmp.ne.s32.totalorder %s1572_s19, %s1258_s11  ;;  %s1263_s17 = scalar_lea.hbm %s1700_s0, 256 }
  0x60   : > { %p1264_p1 = scmp.lt.u32.totalorder %s1572_s19, %s1700_s0  ;;  %p1265_p2 = scmp.lt.u32.totalorder %s1263_s17, %s1258_s11 }
  0x61   : > { %p1261_p12 = pnand %p1260_p9, %p1259_p7  ;;  %p1267_p8 = scmp.lt.u32.totalorder %s1258_s11, %s1572_s19 }
  0x62   : > { %p1266_p4 = por %p1265_p2, %p1264_p1 }
  0x63   : > { %p1262_p0 = pneg %p1261_p12 }
  0x64   : > { %p1268_p13 = por %p1267_p8, %p1266_p4 }
  0x66   : > { %p1269_p6 = pnand %p1268_p13, %p1262_p0 }
  0x68   : > { %1272 = shalt.err (!%p1269_p6)
}
  0x69   : > { %s1273_s16 = scalar_lea.vmem %s1578_s26, 128  ;;  %s1369_s9 = smov [#allocation2]  }
  0x6a   : > { %p1274_p10 = scmp.ne.s32.totalorder %s1578_s26, %s1273_s16  ;;  %s1278_s20 = sshll.u32 %s1369_s9, 4  ;;  %s1279_s20 = int_to_ptr.vmem [resolvable:$false] %s1278_s20 }
  0x6b   : > { %s1280_s8 = scalar_lea.vmem %s1279_s20, 256  ;;  %p1281_p12 = scmp.lt.s32.totalorder %s1578_s26, %s1279_s20 }
  0x6c   : > { %p1276_p3 = pnand %p1274_p10, %p1260_p9  ;;  %p1282_p1 = scmp.lt.s32.totalorder %s1280_s8, %s1273_s16 }
  0x6e   : > { %p1277_p7 = pneg %p1276_p3  ;;  %p1283_p2 = por %p1282_p1, %p1281_p12 }
  0x70   : > { %p1284_p4 = pnand %p1283_p2, %p1277_p7 }
  0x72   : > { %1287 = shalt.err (!%p1284_p4)
}
  0x73   : > { %1117 = dma.hbm_to_vmem [thread:$0]  (!%p1574_p11), %s1572_s19, 128, %s1578_s26, %s245_s10  }
  0x74   : > { %p1718_p0 = scmp.ne.s32.totalorder %s1712_s29, 0 }
  0x75   : > { %s1608_s11 = sand.u32 (!%p1718_p0), 1, %s1354_s22   ;;  %p1719_p9 = scmp.ne.s32.totalorder (!%p1718_p0), %s1710_s27, 0 }
  0x76   : > { %264 = sbr.rel (%p1718_p0) target bundleno = 1326 (0x52e), region = 44  ;;  %s976_s13 = sshll.u32 (!%p1718_p0), %s1608_s11, 3 }
  0x77   : > { %s267_s17 = scalar_lea.sflag (!%p1718_p0), [#allocation3], %s1608_s11  ;;  %s270_s12 = scalar_lea.vmem (!%p1718_p0), [#allocation2], %s976_s13 }
  0x7d   : > { %1333 = dma.done.wait (%p1719_p9), %s267_s17, 128  }
  0x7e   : > { %1335 = vsyncadd (%p1719_p9), %s267_s17, 4294967168  ;;  %p1720_p11 = scmp.eq.s32.totalorder %s1430_s25, 0 }
  0x80   : > { %1337 = dma.done.wait (%p1720_p11), [#allocation6], 1024   ;;  %p1721_p8 = pmov %p1720_p11 }
  0x82   : > { %1339 = vsyncadd (%p1721_p8), [#allocation6], 4294966272  ;;  %p1722_p13 = pmov %p1721_p8 }
  0x83   : > { %p1723_p6 = pmov %p1721_p8 }
  0x84   : > { %1341 = dma.done.wait (%p1722_p13), [#allocation9], 512  }
  0x85   : > { %1343 = vsyncadd (%p1723_p6), [#allocation9], 4294966784  ;;  %v1370_v0 = vmov 0.0|0.0   ;;  %vm1371_vm0 = vmmov 0   ;;  %v1372_v1 = vmov 0.0   ;;  %v390_v2 = vld [vmem:[#allocation7] sm:$0xff] }
  0x86   : > { %1076 = vmatprep.subr.bf16.mxu1 %v1370_v0  ;;  %1036 = vmatprep.mubr.msk.f32.mxu1 %vm1371_vm0, %v1372_v1  ;;  %v391_v3 = vld [vmem:[#allocation7 + $0x8] sm:$0xff]  ;;  %v392_v4 = vld [vmem:[#allocation7 + $0x10] sm:$0xff]  ;;  %v393_v6 = vld [vmem:[#allocation7 + $0x18] sm:$0xff]  ;;  %vm316_vm1 = vcmask 261120   ;;  %vm539_vm2 = vcmask 64512   ;;  %vm764_vm3 = vcmask 31744  }
  0x87   : > { %1070 = vmatprep.subr.bf16.mxu0 %v1370_v0  ;;  %1025 = vmatprep.mubr.msk.f32.mxu0 %vm1371_vm0, %v1372_v1  ;;  %v1077_v5 = vpack.c.bf16 %v391_v3, %v390_v2  ;;  %v312_v7 = vld [vmem:[#allocation5] sm:$0xff]  ;;  %v313_v8 = vld [vmem:[#allocation5 + $0x8] sm:$0xff]  ;;  %v1080_v9 = vpack.c.bf16 %v393_v6, %v392_v4  ;;  %v311_v11 = vld [vmem:[%s270_s12] sm:$0xff]  ;;  %vm779_vm4 = vcmask 1043456   ;;  %s991_s7 = sshll.u32 %s1430_s25, 7  ;;  %s310_s10 = scalar_lea.vmem [#allocation10], %s976_s13 }
  0x88   : > { %v1071_v10 = vpack.c.bf16 %v313_v8, %v312_v7  ;;  %v314_v12 = vld [vmem:[#allocation5 + $0x10] sm:$0xff]  ;;  %v315_v13 = vld [vmem:[#allocation5 + $0x18] sm:$0xff]  ;;  %v464_v15 = vld [vmem:[#allocation8] sm:$0xff]  ;;  %s868_s30 = sshll.u32 %s310_s10, 4  ;;  %s1655_s20 = scalar_lea.hbm %s1706_s6, %s991_s7  ;;  %s1657_s30 = int_to_ptr.vmem [resolvable:$true] %s868_s30 }
  0x89   : > { %1078 = vmatpush3.bf16.msra.mxu1 %v1077_v5  ;;  %v1074_v14 = vpack.c.bf16 %v315_v13, %v314_v12  ;;  %v465_v16 = vld [vmem:[#allocation8 + $0x8] sm:$0xff]  ;;  %v466_v17 = vld [vmem:[#allocation8 + $0x10] sm:$0xff]  ;;  %v467_v19 = vld [vmem:[#allocation8 + $0x18] sm:$0xff]  ;;  %s855_s8 = scalar_lea.sflag [#allocation4], %s1608_s11  ;;  %s1288_s17 = scalar_lea.vmem %s1657_s30, 128 }
  0x8a   : > { %1079 = vmatprep.subr.bf16.mxu1 %v1370_v0  ;;  %1072 = vmatpush3.bf16.msra.mxu0 %v1071_v10  ;;  %v1083_v18 = vpack.c.bf16 %v465_v16, %v464_v15  ;;  %v1086_v20 = vpack.c.bf16 %v467_v19, %v466_v17  ;;  %v538_v21 = vld [vmem:[%s1704_s4] sm:$0xf]  ;;  %p1289_p10 = scmp.ne.s32.totalorder %s1657_s30, %s1288_s17  ;;  %s1373_s25 = smov [#allocation10]  }
  0x8b   : > { %1073 = vmatprep.subr.bf16.mxu0 %v1370_v0  ;;  %v613_v30 = vld [vmem:[%s1705_s5] sm:$0xf]  ;;  %s1292_s13 = sshll.u32 %s1373_s25, 4  ;;  %s1293_s13 = int_to_ptr.vmem [resolvable:$false] %s1292_s13 }
  0x8c   : > { %p1290_p3 = pnand %p1289_p10, %p1563_p5  ;;  %s1294_s12 = scalar_lea.vmem %s1293_s13, 256 }
  0x8d   : > { %1081 = vmatpush3.bf16.msra.mxu1 %v1080_v9  ;;  %p1295_p12 = scmp.lt.s32.totalorder %s1657_s30, %s1293_s13  ;;  %p1296_p1 = scmp.lt.s32.totalorder %s1294_s12, %s1288_s17 }
  0x8e   : > { %1050 = vmatprep.subr.mxu1 %v1372_v1  ;;  %1075 = vmatpush3.bf16.msra.mxu0 %v1074_v14  ;;  %p1291_p7 = pneg %p1290_p3 }
  0x8f   : > { %1082 = vmatprep.subr.bf16.mxu0 %v1370_v0  ;;  %p1297_p2 = por %p1296_p1, %p1295_p12 }
  0x90   : > { %1037 = vmatmul.mubr.msk.f32.vlgmr.msra.gmra.mrb[0].mxu1 %vm316_vm1, %v311_v11 }
  0x91   : > { %1052 = vmatprep.mubr.msk.f32.mxu1 %vm1371_vm0, %v1372_v1  ;;  %1026 = vmatmul.mubr.msk.f32.vlgmr.msra.gmra.mrb[0].mxu0 %vm316_vm1, %v311_v11  ;;  %p1298_p4 = pnand %p1297_p2, %p1291_p7 }
  0x92   : > { %1084 = vmatpush3.bf16.msra.mxu0 %v1083_v18  ;;  %1047 = vmatprep.mubr.msk.f32.mxu0 %vm1371_vm0, %v1372_v1 }
  0x93   : > { %1085 = vmatprep.subr.bf16.mxu0 %v1370_v0 }
  0x96   : > { %1087 = vmatpush3.bf16.msra.mxu0 %v1086_v20 }
  0x97   : > { %1060 = vmatprep.subr.mxu0 %v1372_v1 }
  0x99   : > { %1048 = vmatmul.mubr.msk.f32.vlgmr.msra.gmra.mrb[2].mxu0 %vm316_vm1, %v311_v11 }
  0x9a   : > { %1062 = vmatprep.mubr.msk.f32.mxu0 %vm1371_vm0, %v1372_v1 }
 0x163   : > { %v460_v22 = vpop.f32.mrb[0].mxu1 }
 0x164   : > { %v1038_v23 = vpop.f32.mrb[1].mxu1  ;;  %1051 = vmatpush3.msra.mxu1 %v460_v22  ;;  %v386_v24 = vpop.f32.mrb[0].mxu0 }
 0x165   : > { %1053 = vmatmul.mubr.msk.f32.vlgmr.msra.gmra.mrb[2].mxu1 %vm539_vm2, %v538_v21  ;;  %1055 = vmatprep.subr.mxu1 %v1372_v1  ;;  %v1027_v25 = vpop.f32.mrb[1].mxu0 }
 0x166   : > { %1057 = vmatprep.mubr.msk.f32.mxu1 %vm1371_vm0, %v1372_v1 }
 0x16c   : > { %v534_v26 = vpop.f32.mrb[2].mxu0 }
 0x16d   : > { %v1049_v27 = vpop.f32.mrb[3].mxu0  ;;  %1056 = vmatpush3.msra.mxu1 %v534_v26 }
 0x16e   : > { %1065 = vmatprep.subr.mxu1 %v1372_v1  ;;  %1058 = vmatmul.mubr.msk.f32.vlgmr.msra.gmra.mrb[4].mxu1 %vm539_vm2, %v613_v30 }
 0x16f   : > { %1067 = vmatprep.mubr.msk.f32.mxu1 %vm1371_vm0, %v1372_v1 }
 0x238   : > { %v609_v28 = vpop.f32.mrb[2].mxu1 }
 0x239   : > { %1061 = vmatpush3.xpose.msk.msra.mxu0 %vm316_vm1, %v609_v28  ;;  %v1054_v29 = vpop.f32.mrb[3].mxu1 }
 0x23c   : > { %1063 = vmatmul.mubr.msk.f32.vlgmr.msra.gmra.mrb[4].mxu0 %vm316_vm1, %v386_v24 }
 0x241   : > { %v683_v40 = vpop.f32.mrb[4].mxu1 }
 0x242   : > { %v1059_v41 = vpop.f32.mrb[5].mxu1  ;;  %1066 = vmatpush3.msk.msra.mxu1 %vm779_vm4, %v683_v40 }
 0x30f   : > { %v759_v31 = vpop.f32.mrb[4].mxu0 }
 0x310   : > { %v763_v32 = vmul.f32 0.17677669, %v759_v31  ;;  %v1064_v33 = vpop.f32.mrb[5].mxu0 }
 0x312   : > { %v765_v34 = vsel %vm764_vm3, %v763_v32, -inf }
 0x313   : > { %766 = vmax.xlane.f32.xlu0 %v765_v34 }
 0x3a0   : > { %v767_v35 = vpop.xlane.xlu0 %766 }
 0x3a1   : > { %v768_v36 = vsub.f32 %v763_v32, %v767_v35 }
 0x3a3   : > { %v769_v37 = vmul.f32 1.442695, %v768_v36 }
 0x3a5   : > { %1170 = vpow2.f32 %v769_v37 }
 0x3af   : > { %v1171_v38 = vpop.eup %1170 }
 0x3b0   : > { %v771_v39 = vsel %vm764_vm3, %v1171_v38, 0.0 }
 0x3b1   : > { %772 = vadd.xlane.f32.xlu0 %v771_v39 }
 0x43e   : > { %v773_v42 = vpop.xlane.xlu0 %772 }
 0x43f   : > { %1172 = vrcp.f32 %v773_v42 }
 0x449   : > { %v1173_v43 = vpop.eup %1172 }
 0x44a   : > { %v775_v44 = vmul.f32 %v1173_v43, %v1171_v38 }
 0x44c   : > { %1068 = vmatmul.mubr.msk.f32.vlgmr.msra.gmra.mrb[6].mxu1 %vm764_vm3, %v775_v44 }
 0x51f   : > { %v849_v45 = vpop.f32.mrb[6].mxu1 }
 0x520   : > { %853 = vst.msk [vmem:[%s310_s10] sm:$0xff] %vm316_vm1, %v849_v45  ;;  %v1069_v46 = vpop.f32.mrb[7].mxu1 }
 0x521   : > { %1301 = shalt.err (!%p1298_p4)
}
 0x522   : > { %s1302_s11 = scalar_lea.hbm %s1655_s20, 128  ;;  %s1306_s19 = scalar_lea.hbm %s1706_s6, 256 }
 0x523   : > { %p1303_p0 = scmp.ne.s32.totalorder %s1655_s20, %s1302_s11  ;;  %p1307_p8 = scmp.lt.u32.totalorder %s1655_s20, %s1706_s6 }
 0x524   : > { %p1308_p13 = scmp.lt.u32.totalorder %s1306_s19, %s1302_s11  ;;  %p1310_p10 = scmp.lt.u32.totalorder %s1302_s11, %s1655_s20 }
 0x525   : > { %p1304_p9 = pnand %p1303_p0, %p1563_p5 }
 0x526   : > { %p1309_p6 = por %p1308_p13, %p1307_p8 }
 0x527   : > { %p1305_p11 = pneg %p1304_p9 }
 0x528   : > { %p1311_p3 = por %p1310_p10, %p1309_p6 }
 0x52a   : > { %p1312_p7 = pnand %p1311_p3, %p1305_p11 }
 0x52c   : > { %1315 = shalt.err (!%p1312_p7)
}
 0x52d   : > { %1102 = dma.vmem_to_hbm [thread:$0]  (%p1563_p5), %s1657_s30, 128, %s1655_s20, %s855_s8  }
 0x52e PF: > { %s880_s10 = sand.u32 1, %s1350_s21   ;;  %p1724_p12 = scmp.ne.s32.totalorder %s1711_s28, 0 }
 0x52f   : > { %p1725_p1 = scmp.ge.s32.totalorder %s1362_s24, 2  ;;  %s881_s16 = scalar_lea.sflag [#allocation4], %s880_s10 }
 0x531   : > { %p1119_p2 = pnand %p1725_p1, %p1724_p12 }
 0x533   : > { %1345 = dma.done.wait (!%p1119_p2), %s881_s16, 128  }
 0x534   : > { %1347 = vsyncadd (!%p1119_p2), %s881_s16, 4294967168  ;;  %p21_p4 = scmp.ge.s32.totalorder %s1549_s18, 4   ;;  %s1726_s21 = smov %s1354_s22 }
 0x535   : > { %s1727_s22 = smov %s1358_s23  ;;  %s1728_s23 = smov %s1559_s14 }
 0x536   : > { %s1729_s24 = smov %s1549_s18  ;;  %23 = sbr.rel (!%p21_p4) target bundleno = 7 (0x7), region = 101 }
 0x53d   :  { %886 = vsyncpa [#allocation3], 1 }
 0x53e   :  { %888 = vsyncpa [#allocation3 + $0x1], 1 }
 0x53f   :  { %889 = vsyncpa [#allocation6], 1 }
 0x540   :  { %890 = vsyncpa [#allocation9], 1 }
 0x541   :  { %891 = vsyncpa [#allocation4], 1 }
 0x542   :  { %893 = vsyncpa [#allocation4 + $0x1], 1 }

</bundles_post_ra>
